<compile_context>
chip_gen: v7x
topology: tpu7x:2x2x1
jax: 0.10.0
libtpu: 0.0.40
codegen_flags: <defaults>
</compile_context>

<pallas_src>
import functools
import math

import jax
import jax.numpy as jnp
from jax import lax
from jax.experimental import pallas as pl
from jax.experimental.pallas import tpu as pltpu


def _attention_kernel(x_ref, w_ref, o_ref, *, attention_size, num_rel):
    # x_ref: [TB*N, D] flattened activations for TB relation sets
    # w_ref: [3A, D]   fused QKV weight (PyTorch layout, Wq rows pre-scaled
    #                  by 1/sqrt(A))
    # o_ref: [TB, N, A]
    a = attention_size
    n = num_rel
    tb = x_ref.shape[0] // n
    x = x_ref[...]                                   # [TB*N, D]

    # Static sublane slices of the fused weight: zero-cost views (multiples
    # of the 8-row sublane tile for any A that is a multiple of 8).
    wq = w_ref[0:a, :]
    wk = w_ref[a:2 * a, :]
    wv = w_ref[2 * a:3 * a, :]

    # One large projection per weight slice, contracting last dims (no .T).
    dims = (((1,), (1,)), ((), ()))
    q = lax.dot_general(x, wq, dims, preferred_element_type=jnp.float32)
    k = lax.dot_general(x, wk, dims, preferred_element_type=jnp.float32)
    v = lax.dot_general(x, wv, dims, preferred_element_type=jnp.float32)
    # N divides the sublane tile, so these reshapes are layout-free.
    q = q.reshape(tb, n, a)
    k = k.reshape(tb, n, a)
    v = v.reshape(tb, n, a)

    # scores = (Q / sqrt(A)) K^T  -- scale already folded into Wq rows.
    scores = jnp.einsum('bqd,bkd->bqk', q, k,
                        preferred_element_type=jnp.float32)     # [TB, N, N]

    # Numerically-stable softmax along the last axis (all f32), with
    # deferred normalization applied to the [TB, N, A] PV result.
    m = jnp.max(scores, axis=-1, keepdims=True)
    p = jnp.exp(scores - m)
    denom = jnp.sum(p, axis=-1, keepdims=True)

    pv = jnp.einsum('bqk,bkd->bqd', p, v,
                    preferred_element_type=jnp.float32)          # [TB, N, A]
    out = pv * pl.reciprocal(denom, approx=False)  # exact: keeps f32 accuracy
    o_ref[...] = out.astype(o_ref.dtype)


def fuse_qkv_weights(wq, wk, wv):
    """Fuse the three nn.Linear weights ([A, D] each, PyTorch layout) into a
    single [3A, D] matrix, folding the 1/sqrt(A) score scale into Wq.
    Do this ONCE at parameter-init time, not per forward call."""
    a = wq.shape[0]
    inv_scale = 1.0 / math.sqrt(a)
    return jnp.concatenate([wq * inv_scale, wk, wv], axis=0)


def attention_forward(hidden_state, w_qkv, attention_size, *, block_b=256):
    """hidden_state: [B, num_rel, input_size] (or [num_rel, input_size])
    w_qkv: fused weights from fuse_qkv_weights, shape [3*attention_size, input_size]
    Returns: [B, num_rel, attention_size] (or [num_rel, attention_size])."""
    squeeze = hidden_state.ndim == 2
    if squeeze:
        hidden_state = hidden_state[None]
    b, n, d = hidden_state.shape
    a = attention_size

    # Relation sets processed per grid step; pad B up to a multiple of TB so
    # every block is full (padded rows give a uniform softmax, then dropped).
    tb = max(1, min(block_b, b))
    b_pad = pl.cdiv(b, tb) * tb
    if b_pad != b:
        hidden_state = jnp.pad(hidden_state,
                               ((0, b_pad - b), (0, 0), (0, 0)))

    # Flatten to [B*N, D] in the wrapper (free) -> dense (TB*N, D) x blocks.
    x_flat = hidden_state.reshape(b_pad * n, d)
    grid = (b_pad // tb,)

    kernel = functools.partial(_attention_kernel,
                               attention_size=a, num_rel=n)

    itemsize = jnp.dtype(hidden_state.dtype).itemsize
    cost = pl.CostEstimate(
        flops=2 * b_pad * (n * d * 3 * a + 2 * n * n * a),
        transcendentals=b_pad * n * n,
        bytes_accessed=b_pad * n * (d + a) * itemsize
        + 3 * a * d * jnp.dtype(w_qkv.dtype).itemsize,
    )

    out = pl.pallas_call(
        kernel,
        out_shape=jax.ShapeDtypeStruct((b_pad, n, a), hidden_state.dtype),
        grid=grid,
        in_specs=[
            # TB relation sets of flattened activations per step.
            pl.BlockSpec((tb * n, d), lambda i: (i, 0)),
            # Fused weight: same (loop-invariant) block every step.
            pl.BlockSpec((3 * a, d), lambda i: (0, 0)),
        ],
        out_specs=pl.BlockSpec((tb, n, a), lambda i: (i, 0, 0)),
        compiler_params=pltpu.CompilerParams(
            dimension_semantics=("parallel",),
        ),
        cost_estimate=cost,
    )(x_flat, w_qkv)

    out = out[:b]
    if squeeze:
        out = out[0]
    return out


def _reference(hidden_state, wq, wk, wv):
    a = wq.shape[0]

    def one(x):
        q = x @ wq.T
        k = x @ wk.T
        v = x @ wv.T
        s = jax.nn.softmax((q @ k.T) / math.sqrt(a), axis=-1)
        return s @ v

    if hidden_state.ndim == 3:
        return jax.vmap(one)(hidden_state)
    return one(hidden_state)


if __name__ == "__main__":
    # Small shapes consistent with forward(): a batch of relation sets, each
    # hidden_state = [num_rel, hidden_size]; attention_size == hidden_size.
    batch = 2
    num_rel = 8
    input_size = 32
    attention_size = 32

    key = jax.random.PRNGKey(0)
    k_x, k_q, k_k, k_v = jax.random.split(key, 4)

    hidden_state = jax.random.normal(
        k_x, (batch, num_rel, input_size), dtype=jnp.float32)

    # Deterministic nn.Linear-style init: U(-1/sqrt(fan_in), 1/sqrt(fan_in)),
    # PyTorch layout [attention_size, input_size].
    bound = 1.0 / math.sqrt(input_size)
    wq = jax.random.uniform(k_q, (attention_size, input_size), jnp.float32, -bound, bound)
    wk = jax.random.uniform(k_k, (attention_size, input_size), jnp.float32, -bound, bound)
    wv = jax.random.uniform(k_v, (attention_size, input_size), jnp.float32, -bound, bound)

    # Fuse weights once ("init time"), then run the kernel.
    w_qkv = fuse_qkv_weights(wq, wk, wv)
    out = attention_forward(hidden_state, w_qkv, attention_size)
    out = jax.block_until_ready(out)

    ref = _reference(hidden_state, wq, wk, wv)
    assert out.shape == (batch, num_rel, attention_size)
    assert jnp.allclose(out, ref, atol=1e-4, rtol=1e-4), "mismatch vs reference"

    print("KERNEL_OK")
</pallas_src>

<mosaic_0001>
module attributes {stable_mosaic.version = 11 : i64} {
  func.func @_attention_kernel(%arg0: i32, %arg1: memref<16x32xf32, #tpu.memory_space<vmem>>, %arg2: memref<96x32xf32, #tpu.memory_space<vmem>>, %arg3: memref<2x8x32xf32, #tpu.memory_space<vmem>>) attributes {dimension_semantics = [#tpu.dimension_semantics<parallel>], iteration_bounds = array<i64: 1>, scalar_prefetch = 0 : i64, scratch_operands = 0 : i64, tpu.core_type = #tpu.core_type<tc>, window_params = [{transform_indices = @transform_0, window_bounds = array<i64: 16, 32>}, {pipeline_mode = #tpu.pipeline_mode<synchronous>, transform_indices = @transform_1, window_bounds = array<i64: 96, 32>}, {transform_indices = @transform_2, window_bounds = array<i64: 2, 8, 32>}]} {
    %c0 = arith.constant 0 : index
    %c0_0 = arith.constant 0 : index
    %0 = vector.load %arg1[%c0, %c0_0] : memref<16x32xf32, #tpu.memory_space<vmem>>, vector<16x32xf32>
    %c0_1 = arith.constant 0 : index
    %c0_2 = arith.constant 0 : index
    %1 = vector.load %arg2[%c0_1, %c0_2] : memref<96x32xf32, #tpu.memory_space<vmem>>, vector<32x32xf32>
    %c32 = arith.constant 32 : index
    %c0_3 = arith.constant 0 : index
    %2 = vector.load %arg2[%c32, %c0_3] : memref<96x32xf32, #tpu.memory_space<vmem>>, vector<32x32xf32>
    %c64 = arith.constant 64 : index
    %c0_4 = arith.constant 0 : index
    %3 = vector.load %arg2[%c64, %c0_4] : memref<96x32xf32, #tpu.memory_space<vmem>>, vector<32x32xf32>
    %cst = arith.constant dense<0.000000e+00> : vector<16x32xf32>
    %4 = tpu.matmul %0, %1, %cst {dimension_numbers = #tpu.dot_dimension_numbers<[1], [1], [0], [0], [0, 0, 1, 0], [], []>} : vector<16x32xf32>, vector<32x32xf32>, vector<16x32xf32> -> vector<16x32xf32>
    %cst_5 = arith.constant dense<0.000000e+00> : vector<16x32xf32>
    %5 = tpu.matmul %0, %2, %cst_5 {dimension_numbers = #tpu.dot_dimension_numbers<[1], [1], [0], [0], [0, 0, 1, 0], [], []>} : vector<16x32xf32>, vector<32x32xf32>, vector<16x32xf32> -> vector<16x32xf32>
    %cst_6 = arith.constant dense<0.000000e+00> : vector<16x32xf32>
    %6 = tpu.matmul %0, %3, %cst_6 {dimension_numbers = #tpu.dot_dimension_numbers<[1], [1], [0], [0], [0, 0, 1, 0], [], []>} : vector<16x32xf32>, vector<32x32xf32>, vector<16x32xf32> -> vector<16x32xf32>
    %7 = vector.shape_cast %4 : vector<16x32xf32> to vector<2x8x32xf32>
    %8 = vector.shape_cast %5 : vector<16x32xf32> to vector<2x8x32xf32>
    %9 = vector.shape_cast %6 : vector<16x32xf32> to vector<2x8x32xf32>
    "tpu.trace_start"() <{level = 10 : i32, message = "bqd,bkd->bqk"}> : () -> ()
    %cst_7 = arith.constant dense<0.000000e+00> : vector<2x8x8xf32>
    %10 = tpu.matmul %7, %8, %cst_7 {dimension_numbers = #tpu.dot_dimension_numbers<[2], [2], [1], [1], [0, 0, 0, 1, 1, 1], [0], [0]>} : vector<2x8x32xf32>, vector<2x8x32xf32>, vector<2x8x8xf32> -> vector<2x8x8xf32>
    "tpu.trace_stop"() : () -> ()
    %cst_8 = arith.constant dense<0xFF800000> : vector<2x8xf32>
    %11 = vector.multi_reduction <maximumf>, %10, %cst_8 [2] : vector<2x8x8xf32> to vector<2x8xf32>
    %12 = vector.shape_cast %11 : vector<2x8xf32> to vector<2x8x1xf32>
    %13 = vector.broadcast %12 : vector<2x8x1xf32> to vector<2x8x8xf32>
    %14 = arith.subf %10, %13 : vector<2x8x8xf32>
    %15 = math.exp %14 : vector<2x8x8xf32>
    %cst_9 = arith.constant dense<0.000000e+00> : vector<2x8xf32>
    %16 = vector.multi_reduction <add>, %15, %cst_9 [2] : vector<2x8x8xf32> to vector<2x8xf32>
    %17 = vector.shape_cast %16 : vector<2x8xf32> to vector<2x8x1xf32>
    "tpu.trace_start"() <{level = 10 : i32, message = "bqk,bkd->bqd"}> : () -> ()
    %cst_10 = arith.constant dense<0.000000e+00> : vector<2x8x32xf32>
    %18 = tpu.matmul %15, %9, %cst_10 {dimension_numbers = #tpu.dot_dimension_numbers<[2], [1], [1], [2], [0, 0, 0, 1, 1, 2], [0], [0]>} : vector<2x8x8xf32>, vector<2x8x32xf32>, vector<2x8x32xf32> -> vector<2x8x32xf32>
    "tpu.trace_stop"() : () -> ()
    %19 = tpu.reciprocal %17 : vector<2x8x1xf32> -> vector<2x8x1xf32>
    %20 = vector.broadcast %19 : vector<2x8x1xf32> to vector<2x8x32xf32>
    %21 = arith.mulf %18, %20 : vector<2x8x32xf32>
    %c0_11 = arith.constant 0 : index
    %c0_12 = arith.constant 0 : index
    %c0_13 = arith.constant 0 : index
    %22 = vector.load %arg3[%c0_11, %c0_12, %c0_13] : memref<2x8x32xf32, #tpu.memory_space<vmem>>, vector<2x8x32xf32>
    tpu.vector_store %arg3[%c0_11, %c0_12, %c0_13], %21 {strides = array<i32>} : memref<2x8x32xf32, #tpu.memory_space<vmem>>, vector<2x8x32xf32>,
    return
  }
  func.func @transform_0(%arg0: i32) -> (i32, i32) {
    %c0_i32 = arith.constant 0 : i32
    %c0_i32_0 = arith.constant 0 : i32
    return %arg0, %c0_i32 : i32, i32
  }
  func.func @transform_1(%arg0: i32) -> (i32, i32) {
    %c0_i32 = arith.constant 0 : i32
    %c0_i32_0 = arith.constant 0 : i32
    %c0_i32_1 = arith.constant 0 : i32
    return %c0_i32, %c0_i32_0 : i32, i32
  }
  func.func @transform_2(%arg0: i32) -> (i32, i32, i32) {
    %c0_i32 = arith.constant 0 : i32
    %c0_i32_0 = arith.constant 0 : i32
    %c0_i32_1 = arith.constant 0 : i32
    return %arg0, %c0_i32, %c0_i32_0 : i32, i32, i32
  }
}

</mosaic_0001>

<bundles_post_ra>
// kernel: tpu_custom_call.1
= control target key start
LH: loop header
LB: loop body
LE: loop exit
PB: predicated region body
PF: predicated region fallthrough
CT: control target
= control target key end

     0   :  { %vm26_vm0 = vcmask 261120   ;;  %s935_s0 = inlined_call_operand.vmem [shape: f32[16,32], index: 0, kind: input, shape index: {}]   ;;  %s936_s1 = inlined_call_operand.vmem [shape: f32[96,32], index: 1, kind: input, shape index: {}]   ;;  %s937_s2 = inlined_call_operand.hbm [shape: f32[2,8,32], index: 2, kind: output, shape index: {}]  }
   0x1   :  { %v18_v0 = vld [vmem:[%s936_s1 + $0x20] sm:$0xff]  ;;  %v19_v1 = vld [vmem:[%s936_s1 + $0x28] sm:$0xff]  ;;  %vm840_vm1 = vmpackc.low %vm26_vm0, %vm26_vm0 }
   0x2   :  { %v14_v2 = vld [vmem:[%s936_s1] sm:$0xff]  ;;  %v748_v4 = vpack.c.bf16 %v19_v1, %v18_v0  ;;  %v15_v5 = vld [vmem:[%s936_s1 + $0x8] sm:$0xff]  ;;  %v20_v6 = vld [vmem:[%s936_s1 + $0x30] sm:$0xff] }
   0x3   :  { %v736_v7 = vpack.c.bf16 %v15_v5, %v14_v2  ;;  %v21_v8 = vld [vmem:[%s936_s1 + $0x38] sm:$0xff]  ;;  %v16_v9 = vld [vmem:[%s936_s1 + $0x10] sm:$0xff]  ;;  %v12_v13 = vld [vmem:[%s935_s0] sm:$0xff] }
   0x4   :  { %v17_v10 = vld [vmem:[%s936_s1 + $0x18] sm:$0xff]  ;;  %750 = vmatprep.subr.msk.bf16.mxu1 %vm840_vm1, %v748_v4  ;;  %v754_v11 = vpack.c.bf16 %v21_v8, %v20_v6 }
   0x5   :  { %v742_v12 = vpack.c.bf16 %v17_v10, %v16_v9 }
   0x6   :  { %7 = vsyncpa [#allocation3], 0  ;;  %753 = vmatpush3.bf16.xpose.msk.msra.mxu1 %vm840_vm1, %v748_v4  ;;  %738 = vmatprep.subr.msk.bf16.mxu0 %vm840_vm1, %v736_v7  ;;  %v13_v14 = vld [vmem:[%s935_s0 + $0x8] sm:$0xff]  ;;  %v809_v15 = vmov 0.0   ;;  %vm810_vm2 = vmmov 0   ;;  %v22_v16 = vld [vmem:[%s936_s1 + $0x40] sm:$0xff] }
   0x7   :  { %741 = vmatpush3.bf16.xpose.msk.msra.mxu0 %vm840_vm1, %v736_v7  ;;  %756 = vmatprep.subr.msk.bf16.mxu1 %vm840_vm1, %v754_v11  ;;  %v23_v17 = vld [vmem:[%s936_s1 + $0x48] sm:$0xff]  ;;  %v24_v18 = vld [vmem:[%s936_s1 + $0x50] sm:$0xff]  ;;  %v25_v20 = vld [vmem:[%s936_s1 + $0x58] sm:$0xff]  ;;  %vm446_vm3 = vcmask 64512   ;;  %s811_s1 = smov [#allocation2]  }
   0x8   :  { %744 = vmatprep.subr.msk.bf16.mxu0 %vm840_vm1, %v742_v12  ;;  %702 = vmatprep.mubr.msk.f32.mxu1 %vm26_vm0, %v12_v13  ;;  %v760_v19 = vpack.c.bf16 %v23_v17, %v22_v16  ;;  %v766_v21 = vpack.c.bf16 %v25_v20, %v24_v18  ;;  %s622_s8 = sshll.u32 %s811_s1, 4  ;;  %s623_s8 = int_to_ptr.vmem [resolvable:$true] %s622_s8 }
   0x9   :  { %691 = vmatprep.mubr.msk.f32.mxu0 %vm26_vm0, %v12_v13  ;;  %s785_s9 = scalar_lea.vmem %s623_s8, 256  ;;  %p790_p1 = scmp.lt.s32.totalorder %s623_s8, %s623_s8 }
   0xa   :  { %p786_p0 = scmp.ne.s32.totalorder %s623_s8, %s785_s9  ;;  %p791_p2 = scmp.lt.s32.totalorder %s785_s9, %s785_s9 }
   0xc   :  { %p792_p3 = por %p791_p2, %p790_p1 }
   0xe   :  { %759 = vmatpush3.bf16.xpose.msk.msra.mxu1 %vm840_vm1, %v754_v11  ;;  %p793_p4 = pnand %p792_p3, %p786_p0 }
   0xf   :  { %747 = vmatpush3.bf16.xpose.msk.msra.mxu0 %vm840_vm1, %v742_v12  ;;  %716 = vmatprep.subr.mxu1 %v809_v15 }
  0x10   :  { %762 = vmatprep.subr.msk.bf16.mxu0 %vm840_vm1, %v760_v19 }
  0x15   :  { %703 = vmatmul.mubr.msk.f32.vlgmr.msra.gmra.mrb[0].mxu1 %vm26_vm0, %v13_v14 }
  0x16   :  { %692 = vmatmul.mubr.msk.f32.vlgmr.msra.gmra.mrb[0].mxu0 %vm26_vm0, %v13_v14  ;;  %718 = vmatprep.mubr.msk.f32.mxu1 %vm810_vm2, %v809_v15 }
  0x17   :  { %713 = vmatprep.mubr.msk.f32.mxu0 %vm26_vm0, %v12_v13  ;;  %765 = vmatpush3.bf16.xpose.msk.msra.mxu0 %vm840_vm1, %v760_v19 }
  0x18   :  { %768 = vmatprep.subr.msk.bf16.mxu0 %vm840_vm1, %v766_v21 }
  0x1f   :  { %771 = vmatpush3.bf16.xpose.msk.msra.mxu0 %vm840_vm1, %v766_v21 }
  0x26   :  { %714 = vmatmul.mubr.msk.f32.vlgmr.msra.gmra.mrb[2].mxu0 %vm26_vm0, %v13_v14 }
  0xe8   :  { %v704_v22 = vpop.f32.mrb[0].mxu1 }
  0xe9   :  { %v198_v23 = vpop.f32.mrb[1].mxu1  ;;  %v693_v24 = vpop.f32.mrb[0].mxu0 }
  0xea   :  { %717 = vmatpush3.xpose.msk.msra.mxu1 %vm26_vm0, %v198_v23  ;;  %v111_v25 = vpop.f32.mrb[1].mxu0 }
  0xeb   :  { %721 = vmatprep.subr.mxu1 %v809_v15 }
  0xed   :  { %719 = vmatmul.mubr.msk.f32.vlgmr.msra.gmra.mrb[2].mxu1 %vm26_vm0, %v111_v25 }
  0xee   :  { %722 = vmatpush3.xpose.msk.msra.mxu1 %vm26_vm0, %v704_v22  ;;  %723 = vmatprep.mubr.msk.f32.mxu1 %vm810_vm2, %v809_v15 }
  0xef   :  { %726 = vmatprep.subr.mxu1 %v809_v15 }
  0xf1   :  { %724 = vmatmul.mubr.msk.f32.vlgmr.msra.gmra.mrb[4].mxu1 %vm26_vm0, %v693_v24 }
  0xf2   :  { %728 = vmatprep.mubr.msk.f32.mxu1 %vm810_vm2, %v809_v15 }
  0xf9   :  { %v715_v32 = vpop.f32.mrb[2].mxu0 }
  0xfa   :  { %v285_v33 = vpop.f32.mrb[3].mxu0 }
  0xfb   :  { %727 = vmatpush3.msra.mxu1 %v285_v33 }
  0xfc   :  { %731 = vmatprep.subr.mxu1 %v809_v15 }
 0x1c0   :  { %v366_v26 = vpop.f32.mrb[2].mxu1 }
 0x1c1   :  { %v720_v27 = vpop.f32.mrb[3].mxu1  ;;  %v447_v28 = vsel %vm446_vm3, %v366_v26, -inf }
 0x1c2   :  { %448 = vmax.xlane.f32.xlu0 %v447_v28 }
 0x1c4   :  { %v442_v29 = vpop.f32.mrb[4].mxu1 }
 0x1c5   :  { %v725_v30 = vpop.f32.mrb[5].mxu1  ;;  %v450_v31 = vsel %vm446_vm3, %v442_v29, -inf }
 0x1c6   :  { %451 = vmax.xlane.f32.xlu0 %v450_v31 }
 0x24f   :  { %v449_v34 = vpop.xlane.xlu0 %448 }
 0x250   :  { %v453_v35 = vsub.f32 %v366_v26, %v449_v34 }
 0x252   :  { %v455_v36 = vmul.f32 1.442695, %v453_v35 }
 0x253   :  { %v452_v37 = vpop.xlane.xlu0 %451 }
 0x254   :  { %777 = vpow2.f32 %v455_v36  ;;  %v454_v38 = vsub.f32 %v442_v29, %v452_v37 }
 0x256   :  { %v457_v39 = vmul.f32 1.442695, %v454_v38 }
 0x258   :  { %779 = vpow2.f32 %v457_v39 }
 0x25e   :  { %v778_v40 = vpop.eup %777 }
 0x25f   :  { %729 = vmatmul.mubr.msk.f32.vlgmr.msra.gmra.mrb[6].mxu1 %vm446_vm3, %v778_v40  ;;  %v459_v41 = vsel %vm446_vm3, %v778_v40, 0.0 }
 0x260   :  { %732 = vmatpush3.msra.mxu1 %v715_v32  ;;  %460 = vadd.xlane.f32.xlu1 %v459_v41 }
 0x261   :  { %733 = vmatprep.mubr.msk.f32.mxu1 %vm810_vm2, %v809_v15 }
 0x262   :  { %v780_v42 = vpop.eup %779 }
 0x263   :  { %734 = vmatmul.mubr.msk.f32.vlgmr.msra.gmra.mrb[8].mxu1 %vm446_vm3, %v780_v42  ;;  %v462_v43 = vsel %vm446_vm3, %v780_v42, 0.0 }
 0x264   :  { %463 = vadd.xlane.f32.xlu1 %v462_v43 }
 0x2ed   :  { %v461_v44 = vpop.xlane.xlu1 %460 }
 0x2ee   :  { %781 = vrcp.f32 %v461_v44 }
 0x2f1   :  { %v464_v45 = vpop.xlane.xlu1 %463 }
 0x2f2   :  { %783 = vrcp.f32 %v464_v45 }
 0x2f8   :  { %v782_v46 = vpop.eup %781 }
 0x2fc   :  { %v784_v50 = vpop.eup %783 }
 0x332   :  { %v534_v47 = vpop.f32.mrb[6].mxu1 }
 0x333   :  { %v613_v48 = vmul.f32 %v782_v46, %v534_v47  ;;  %v730_v49 = vpop.f32.mrb[7].mxu1 }
 0x335   :  { %615 = vst.msk [vmem:[#allocation2] sm:$0xff] %vm26_vm0, %v613_v48 }
 0x336   :  { %v607_v51 = vpop.f32.mrb[8].mxu1 }
 0x337   :  { %v614_v52 = vmul.f32 %v784_v50, %v607_v51  ;;  %v735_v53 = vpop.f32.mrb[9].mxu1 }
 0x339   :  { %616 = vst.msk [vmem:[#allocation2 + $0x8] sm:$0xff] %vm26_vm0, %v614_v52 }
 0x33a   :  { %796 = shalt.err (!%p793_p4)
}
 0x33b   :  { %s797_s12 = scalar_lea.hbm %s937_s2, 256 }
 0x33c   :  { %p798_p5 = scmp.ne.s32.totalorder %s937_s2, %s797_s12  ;;  %p801_p6 = scmp.lt.u32.totalorder %s797_s12, %s937_s2 }
 0x33e   :  { %p803_p7 = pnand %p801_p6, %p798_p5 }
 0x340   :  { %806 = shalt.err (!%p803_p7)
}
 0x341   :  { %s812_s17 = smov 128   ;;  %s813_s18 = smov 8  }
 0x342   :  { %628 = dma.vmem_to_hbm [thread:$0]  %s623_s8, 256, %s937_s2, [#allocation3], %s812_s17, %s812_s17, %s813_s18  }
 0x343   :  { %807 = dma.done.wait [#allocation3], 256  }
 0x344   :  { %808 = vsyncadd [#allocation3], 4294967040 }
 0x345   :  { %632 = vsyncpa [#allocation3], 1 }

</bundles_post_ra>
